<compile_context>
chip_gen: v7x
topology: tpu7x:2x2x1
jax: 0.10.0
libtpu: 0.0.40
codegen_flags: <defaults>
</compile_context>

<pallas_src>
import functools

import jax
import jax.numpy as jnp
from jax.experimental import pallas as pl
from jax.experimental.pallas import tpu as pltpu

# ----------------------------- configuration ------------------------------
NET_DEPTH = 4
NET_WIDTH = 32
NET_DEPTH_CONDITION = 1
NET_WIDTH_CONDITION = 32
SKIP_INDEX = 2
NUM_RGB_CHANNELS = 3
NUM_DENSITY_CHANNELS = 1
XYZ_DIM = 24
VIEW_DIM = 16

BATCH = 2
NUM_SAMPLES = 64

_TARGET_ROWS = 8192          # target rows (TB * S) per grid step
_LANE = 128                  # samples per batch padded to a multiple of this


def _round_up(n, m):
    return ((n + m - 1) // m) * m


# packed output rows: rgb in rows [0:3], density in row [3], rest zero.
OUT_PACK = max(8, _round_up(NUM_RGB_CHANNELS + NUM_DENSITY_CHANNELS, 8))
# slab padding for the (out, in) dims of every weight matrix.
WPAD = _round_up(max(NET_WIDTH, NET_WIDTH_CONDITION, XYZ_DIM, OUT_PACK), 8)


def _is_skip_layer(i):
    """Trunk layer i takes [h, inputs] (width + xyz) as input."""
    return i > 1 and (i - 1) % SKIP_INDEX == 0


# ----------------------------- parameter init -----------------------------
def _xavier_uniform(key, fan_in, fan_out):
    bound = jnp.sqrt(6.0 / (fan_in + fan_out))
    return jax.random.uniform(key, (fan_in, fan_out), jnp.float32, -bound, bound)


def _bias(key, fan_in, fan_out):
    # PyTorch Linear default bias init: U(-1/sqrt(fan_in), 1/sqrt(fan_in)).
    bound = 1.0 / jnp.sqrt(float(fan_in))
    return jax.random.uniform(key, (1, fan_out), jnp.float32, -bound, bound)


def init_params(key):
    """Flat list of (in,out) weights and (1,out) biases, module layer order."""
    params = []
    keys = iter(jax.random.split(key, 64))

    # main trunk
    for i in range(NET_DEPTH):
        if i == 0:
            dim_in, dim_out = XYZ_DIM, NET_WIDTH
        elif _is_skip_layer(i):
            dim_in, dim_out = NET_WIDTH + XYZ_DIM, NET_WIDTH
        else:
            dim_in, dim_out = NET_WIDTH, NET_WIDTH
        params.append(_xavier_uniform(next(keys), dim_in, dim_out))
        params.append(_bias(next(keys), dim_in, dim_out))

    # density head
    params.append(_xavier_uniform(next(keys), NET_WIDTH, NUM_DENSITY_CHANNELS))
    params.append(_bias(next(keys), NET_WIDTH, NUM_DENSITY_CHANNELS))

    # extra (bottleneck) layer
    params.append(_xavier_uniform(next(keys), NET_WIDTH, NET_WIDTH))
    params.append(_bias(next(keys), NET_WIDTH, NET_WIDTH))

    # view-conditioned branch
    for i in range(NET_DEPTH_CONDITION):
        if i == 0:
            dim_in, dim_out = NET_WIDTH + VIEW_DIM, NET_WIDTH_CONDITION
        else:
            dim_in, dim_out = NET_WIDTH_CONDITION, NET_WIDTH_CONDITION
        params.append(_xavier_uniform(next(keys), dim_in, dim_out))
        params.append(_bias(next(keys), dim_in, dim_out))

    # color head
    params.append(_xavier_uniform(next(keys), NET_WIDTH_CONDITION, NUM_RGB_CHANNELS))
    params.append(_bias(next(keys), NET_WIDTH_CONDITION, NUM_RGB_CHANNELS))
    return params


# ----------------------- wrapper-side weight restructuring ------------------
def _prepare_kernel_params(params, compute_dtype):
    """Pack module params into two padded slabs (transposed weights + biases).

    Returns (w_slab, b_slab, w_view, b_view):
      w_slab: (NW, WPAD, WPAD) compute_dtype — (out, in) transposed weights.
      b_slab: (NB, WPAD, 1)    float32      — bias columns (stay f32).
      w_view, b_view: view-direction rows of the first view-layer weight and
      its bias; the wrapper folds them into a per-batch projection.
    """
    idx = 0
    w_list, b_list = [], []

    def addw(w):  # w: (in, out) -> transposed + zero-padded to (WPAD, WPAD)
        wt = jnp.zeros((WPAD, WPAD), jnp.float32)
        wt = wt.at[: w.shape[1], : w.shape[0]].set(w.T)
        w_list.append(wt)

    def addb(b):  # b: (1, out) -> (WPAD, 1) column
        bt = jnp.zeros((WPAD, 1), jnp.float32)
        bt = bt.at[: b.shape[1], 0].set(b[0])
        b_list.append(bt)

    # trunk: skip layers get their weight split along the input dim so the
    # kernel never needs a concatenation.
    for i in range(NET_DEPTH):
        w, b = params[idx], params[idx + 1]
        idx += 2
        if _is_skip_layer(i):
            addw(w[:NET_WIDTH])
            addw(w[NET_WIDTH:])
        else:
            addw(w)
        addb(b)

    wd, bd = params[idx], params[idx + 1]; idx += 2      # density head
    we, be = params[idx], params[idx + 1]; idx += 2      # extra / bottleneck
    addw(we); addb(be)

    # first view layer: split [bottleneck | view_dir] input.
    wv0, bv0 = params[idx], params[idx + 1]; idx += 2
    addw(wv0[:NET_WIDTH])                                # bottleneck part
    w_view, b_view = wv0[NET_WIDTH:], bv0                # view-dir part (wrapper)

    for _ in range(NET_DEPTH_CONDITION - 1):
        addw(params[idx]); addb(params[idx + 1])
        idx += 2

    wc, bc = params[idx], params[idx + 1]; idx += 2      # color head

    # heads packed into one lane-dense (OUT_PACK, rows) output:
    #   rgb -> rows [0:3], density -> row [3].
    d0 = NUM_RGB_CHANNELS
    d1 = NUM_RGB_CHANNELS + NUM_DENSITY_CHANNELS
    wc_pack = jnp.zeros((NET_WIDTH_CONDITION, OUT_PACK), jnp.float32)
    wc_pack = wc_pack.at[:, :d0].set(wc)
    wd_pack = jnp.zeros((NET_WIDTH, OUT_PACK), jnp.float32)
    wd_pack = wd_pack.at[:, d0:d1].set(wd)
    b_pack = jnp.zeros((1, OUT_PACK), jnp.float32)
    b_pack = b_pack.at[:, :d0].set(bc)
    b_pack = b_pack.at[:, d0:d1].set(bd)
    addw(wc_pack)
    addw(wd_pack)
    addb(b_pack)

    w_slab = jnp.stack(w_list).astype(compute_dtype)     # MXU operands
    b_slab = jnp.stack(b_list)                           # stays float32
    return w_slab, b_slab, w_view, b_view


# ------------------------------- the kernel -------------------------------
def _mlp_kernel(x_ref, vdp_ref, w_ref, b_ref, o_ref, vdrow_ref, *, tb, s):
    """Transposed-layout fused MLP.

    x_ref:     (XYZ_DIM, R)   compute_dtype, R = tb * s rows on the lane axis.
    vdp_ref:   (1, Wc, tb)    f32 per-batch view projection (acts as bias).
    w_ref:     (NW, WPAD, WPAD) compute_dtype weight slab (transposed).
    b_ref:     (NB, WPAD, 1)  f32 bias slab.
    o_ref:     (OUT_PACK, R)  packed rgb (rows 0:3) + density (row 3).
    vdrow_ref: (Wc, R)        f32 VMEM scratch for the expanded view bias.
    """
    cd = x_ref.dtype
    wi = 0
    bi = 0

    def next_w(dout, din):
        nonlocal wi
        w = w_ref[wi, :dout, :din]
        wi += 1
        return w

    def next_b(dout):
        nonlocal bi
        b = b_ref[bi, :dout]
        bi += 1
        return b

    x0 = x_ref[...]                                     # (XYZ_DIM, R)

    # --- trunk (skip handled by split weights: W_h @ h + W_skip @ x0) ---
    h = x0
    hin = XYZ_DIM
    for i in range(NET_DEPTH):
        if _is_skip_layer(i):
            pre = (jnp.dot(next_w(NET_WIDTH, NET_WIDTH), h,
                           preferred_element_type=jnp.float32)
                   + jnp.dot(next_w(NET_WIDTH, XYZ_DIM), x0,
                             preferred_element_type=jnp.float32))
        else:
            pre = jnp.dot(next_w(NET_WIDTH, hin), h,
                          preferred_element_type=jnp.float32)
        h = jnp.maximum(pre + next_b(NET_WIDTH), 0.0).astype(cd)
        hin = NET_WIDTH

    # --- bottleneck (extra layer, no activation) ---
    bott = (jnp.dot(next_w(NET_WIDTH, NET_WIDTH), h,
                    preferred_element_type=jnp.float32)
            + next_b(NET_WIDTH)).astype(cd)

    # --- first view-conditioned layer ---
    # Expand the per-batch view projection (already includes that layer's
    # bias) across each batch's lane range of this tile.
    for i in range(tb):
        vdrow_ref[:, i * s:(i + 1) * s] = jnp.broadcast_to(
            vdp_ref[0, :, i:i + 1], (NET_WIDTH_CONDITION, s))

    v = jnp.maximum(
        jnp.dot(next_w(NET_WIDTH_CONDITION, NET_WIDTH), bott,
                preferred_element_type=jnp.float32) + vdrow_ref[...],
        0.0).astype(cd)

    for _ in range(NET_DEPTH_CONDITION - 1):
        v = jnp.maximum(
            jnp.dot(next_w(NET_WIDTH_CONDITION, NET_WIDTH_CONDITION), v,
                    preferred_element_type=jnp.float32)
            + next_b(NET_WIDTH_CONDITION), 0.0).astype(cd)

    # --- fused packed heads: color (view branch) + density (trunk) ---
    packed = (jnp.dot(next_w(OUT_PACK, NET_WIDTH_CONDITION), v,
                      preferred_element_type=jnp.float32)
              + jnp.dot(next_w(OUT_PACK, NET_WIDTH), h,
                        preferred_element_type=jnp.float32)
              + next_b(OUT_PACK))
    o_ref[...] = packed.astype(o_ref.dtype)


# ------------------------------- wrapper -----------------------------------
@functools.partial(jax.jit, static_argnames=("compute_dtype",))
def mlp_forward(x, view_direction, params, *, compute_dtype=jnp.bfloat16):
    """x: [batch, num_samples, xyz_dim]; view_direction: [batch, view_dim]."""
    batch, num_samples, xyz_dim = x.shape
    assert xyz_dim == XYZ_DIM

    w_slab, b_slab, w_view, b_view = _prepare_kernel_params(params, compute_dtype)

    # per-batch projection of the view direction through its slice of the
    # first view-layer weight (+ that layer's bias); tiny, stays f32.
    vd_proj = view_direction.astype(jnp.float32) @ w_view + b_view   # (batch, Wc)

    # --- tiling: each grid step handles all samples of TB consecutive batch
    # rows, flattened to R = TB * S rows on the lane axis. -------------------
    s_pad = _round_up(num_samples, _LANE)
    tb = max(1, _TARGET_ROWS // s_pad)
    tb = min(tb, batch)
    if batch >= 2:                      # expose >= 2 grid steps (v7x megacore)
        tb = min(tb, max(1, (batch + 1) // 2))
    b_pad = _round_up(batch, tb)
    n_tiles = b_pad // tb
    rows_tile = tb * s_pad
    rows_total = b_pad * s_pad

    # x -> (XYZ_DIM, rows) with row index = b * s_pad + s on the lane axis.
    x_p = jnp.pad(x, ((0, b_pad - batch), (0, s_pad - num_samples), (0, 0)))
    x_t = x_p.astype(compute_dtype).transpose(2, 0, 1).reshape(XYZ_DIM, rows_total)

    # vd_proj -> (n_tiles, Wc, TB): each grid step reads its own TB columns.
    vd_p = jnp.pad(vd_proj, ((0, b_pad - batch), (0, 0)))
    vd_t = vd_p.reshape(n_tiles, tb, NET_WIDTH_CONDITION).transpose(0, 2, 1)

    kernel = functools.partial(_mlp_kernel, tb=tb, s=s_pad)

    in_specs = [
        pl.BlockSpec((XYZ_DIM, rows_tile), lambda t: (0, t)),
        pl.BlockSpec((1, NET_WIDTH_CONDITION, tb), lambda t: (t, 0, 0)),
        pl.BlockSpec(w_slab.shape, lambda t: (0, 0, 0)),
        pl.BlockSpec(b_slab.shape, lambda t: (0, 0, 0)),
    ]
    out_spec = pl.BlockSpec((OUT_PACK, rows_tile), lambda t: (0, t))
    out_shape = jax.ShapeDtypeStruct((OUT_PACK, rows_total), jnp.float32)

    packed = pl.pallas_call(
        kernel,
        out_shape=out_shape,
        grid_spec=pltpu.PrefetchScalarGridSpec(
            num_scalar_prefetch=0,
            grid=(n_tiles,),
            in_specs=in_specs,
            out_specs=out_spec,
            scratch_shapes=[
                pltpu.VMEM((NET_WIDTH_CONDITION, rows_tile), jnp.float32)],
        ),
        compiler_params=pltpu.CompilerParams(
            dimension_semantics=("parallel",)),
    )(x_t, vd_t, w_slab, b_slab)

    # unpack: rows -> (batch, num_samples); rgb rows 0:3, density row 3.
    out = packed.reshape(OUT_PACK, b_pad, s_pad)[:, :batch, :num_samples]
    d0 = NUM_RGB_CHANNELS
    d1 = NUM_RGB_CHANNELS + NUM_DENSITY_CHANNELS
    raw_rgb = out[:d0].transpose(1, 2, 0)
    raw_density = out[d0:d1].transpose(1, 2, 0)
    return raw_rgb, raw_density


# --------------------------- pure-JAX reference -----------------------------
def mlp_reference(x, view_direction, params):
    idx = 0
    main = []
    for _ in range(NET_DEPTH):
        main.append((params[idx], params[idx + 1])); idx += 2
    wd, bd = params[idx], params[idx + 1]; idx += 2
    we, be = params[idx], params[idx + 1]; idx += 2
    view_layers = []
    for _ in range(NET_DEPTH_CONDITION):
        view_layers.append((params[idx], params[idx + 1])); idx += 2
    wc, bc = params[idx], params[idx + 1]; idx += 2

    num_samples = x.shape[1]
    inputs = x
    h = x
    for i, (w, b) in enumerate(main):
        h = jnp.maximum(h @ w + b, 0.0)
        if i % SKIP_INDEX == 0 and i > 0:
            h = jnp.concatenate([h, inputs], axis=-1)
    raw_density = h @ wd + bd
    bottleneck = h @ we + be
    vd = jnp.broadcast_to(view_direction[:, None, :],
                          (x.shape[0], num_samples, VIEW_DIM))
    h = jnp.concatenate([bottleneck, vd], axis=-1)
    for (w, b) in view_layers:
        h = jnp.maximum(h @ w + b, 0.0)
    raw_rgb = h @ wc + bc
    return raw_rgb, raw_density


# --------------------------------- main -------------------------------------
if __name__ == "__main__":
    key = jax.random.PRNGKey(0)
    k_param, k_x, k_v = jax.random.split(key, 3)

    params = init_params(k_param)
    x = jax.random.normal(k_x, (BATCH, NUM_SAMPLES, XYZ_DIM), jnp.float32)
    view_direction = jax.random.normal(k_v, (BATCH, VIEW_DIM), jnp.float32)

    ref_rgb, ref_density = mlp_reference(x, view_direction, params)

    # f32 MXU-operand path — exact check against the pure-JAX reference.
    rgb_f32, dens_f32 = mlp_forward(x, view_direction, params,
                                    compute_dtype=jnp.float32)
    rgb_f32 = jax.block_until_ready(rgb_f32)
    dens_f32 = jax.block_until_ready(dens_f32)

    assert rgb_f32.shape == (BATCH, NUM_SAMPLES, NUM_RGB_CHANNELS)
    assert dens_f32.shape == (BATCH, NUM_SAMPLES, NUM_DENSITY_CHANNELS)
    assert jnp.allclose(rgb_f32, ref_rgb, atol=1e-4, rtol=1e-4)
    assert jnp.allclose(dens_f32, ref_density, atol=1e-4, rtol=1e-4)

    # default bf16 MXU-operand path (f32 accumulation, f32 biases/vd_proj) —
    # loose check.
    rgb_bf16, dens_bf16 = mlp_forward(x, view_direction, params)
    rgb_bf16 = jax.block_until_ready(rgb_bf16)
    dens_bf16 = jax.block_until_ready(dens_bf16)
    assert float(jnp.max(jnp.abs(rgb_bf16 - ref_rgb))) < 1e-1
    assert float(jnp.max(jnp.abs(dens_bf16 - ref_density))) < 1e-1

    print("KERNEL_OK")
</pallas_src>

<mosaic_0001>
module attributes {stable_mosaic.version = 11 : i64} {
  func.func @_mlp_kernel(%arg0: i32, %arg1: memref<24x128xf32, #tpu.memory_space<vmem>>, %arg2: memref<1x32x1xf32, #tpu.memory_space<vmem>>, %arg3: memref<9x32x32xf32, #tpu.memory_space<vmem>>, %arg4: memref<6x32x1xf32, #tpu.memory_space<vmem>>, %arg5: memref<8x128xf32, #tpu.memory_space<vmem>>, %arg6: memref<32x128xf32, #tpu.memory_space<vmem>>) attributes {dimension_semantics = [#tpu.dimension_semantics<parallel>], iteration_bounds = array<i64: 2>, scalar_prefetch = 0 : i64, scratch_operands = 1 : i64, tpu.core_type = #tpu.core_type<tc>, window_params = [{transform_indices = @transform_0, window_bounds = array<i64: 24, 128>}, {transform_indices = @transform_1, window_bounds = array<i64: 1, 32, 1>}, {pipeline_mode = #tpu.pipeline_mode<synchronous>, transform_indices = @transform_2, window_bounds = array<i64: 9, 32, 32>}, {pipeline_mode = #tpu.pipeline_mode<synchronous>, transform_indices = @transform_3, window_bounds = array<i64: 6, 32, 1>}, {transform_indices = @transform_4, window_bounds = array<i64: 8, 128>}]} {
    %c0 = arith.constant 0 : index
    %c0_0 = arith.constant 0 : index
    %0 = vector.load %arg1[%c0, %c0_0] : memref<24x128xf32, #tpu.memory_space<vmem>>, vector<24x128xf32>
    %c0_1 = arith.constant 0 : index
    %c0_2 = arith.constant 0 : index
    %c0_3 = arith.constant 0 : index
    %1 = vector.load %arg3[%c0_1, %c0_2, %c0_3] : memref<9x32x32xf32, #tpu.memory_space<vmem>>, vector<1x32x24xf32>
    %2 = vector.shape_cast %1 : vector<1x32x24xf32> to vector<32x24xf32>
    %cst = arith.constant dense<0.000000e+00> : vector<32x128xf32>
    %3 = tpu.matmul %2, %0, %cst {dimension_numbers = #tpu.dot_dimension_numbers<[1], [0], [0], [1], [0, 0, 1, 1], [], []>} : vector<32x24xf32>, vector<24x128xf32>, vector<32x128xf32> -> vector<32x128xf32>
    %c0_4 = arith.constant 0 : index
    %c0_5 = arith.constant 0 : index
    %c0_6 = arith.constant 0 : index
    %4 = vector.load %arg4[%c0_4, %c0_5, %c0_6] : memref<6x32x1xf32, #tpu.memory_space<vmem>>, vector<1x32x1xf32>
    %5 = vector.shape_cast %4 : vector<1x32x1xf32> to vector<32x1xf32>
    %6 = vector.broadcast %5 : vector<32x1xf32> to vector<32x128xf32>
    %7 = arith.addf %3, %6 : vector<32x128xf32>
    %cst_7 = arith.constant 0.000000e+00 : f32
    %8 = vector.broadcast %cst_7 : f32 to vector<32x128xf32>
    %9 = arith.maximumf %7, %8 : vector<32x128xf32>
    %c1 = arith.constant 1 : index
    %c0_8 = arith.constant 0 : index
    %c0_9 = arith.constant 0 : index
    %10 = vector.load %arg3[%c1, %c0_8, %c0_9] : memref<9x32x32xf32, #tpu.memory_space<vmem>>, vector<1x32x32xf32>
    %11 = vector.shape_cast %10 : vector<1x32x32xf32> to vector<32x32xf32>
    %cst_10 = arith.constant dense<0.000000e+00> : vector<32x128xf32>
    %12 = tpu.matmul %11, %9, %cst_10 {dimension_numbers = #tpu.dot_dimension_numbers<[1], [0], [0], [1], [0, 0, 1, 1], [], []>} : vector<32x32xf32>, vector<32x128xf32>, vector<32x128xf32> -> vector<32x128xf32>
    %c1_11 = arith.constant 1 : index
    %c0_12 = arith.constant 0 : index
    %c0_13 = arith.constant 0 : index
    %13 = vector.load %arg4[%c1_11, %c0_12, %c0_13] : memref<6x32x1xf32, #tpu.memory_space<vmem>>, vector<1x32x1xf32>
    %14 = vector.shape_cast %13 : vector<1x32x1xf32> to vector<32x1xf32>
    %15 = vector.broadcast %14 : vector<32x1xf32> to vector<32x128xf32>
    %16 = arith.addf %12, %15 : vector<32x128xf32>
    %cst_14 = arith.constant 0.000000e+00 : f32
    %17 = vector.broadcast %cst_14 : f32 to vector<32x128xf32>
    %18 = arith.maximumf %16, %17 : vector<32x128xf32>
    %c2 = arith.constant 2 : index
    %c0_15 = arith.constant 0 : index
    %c0_16 = arith.constant 0 : index
    %19 = vector.load %arg3[%c2, %c0_15, %c0_16] : memref<9x32x32xf32, #tpu.memory_space<vmem>>, vector<1x32x32xf32>
    %20 = vector.shape_cast %19 : vector<1x32x32xf32> to vector<32x32xf32>
    %cst_17 = arith.constant dense<0.000000e+00> : vector<32x128xf32>
    %21 = tpu.matmul %20, %18, %cst_17 {dimension_numbers = #tpu.dot_dimension_numbers<[1], [0], [0], [1], [0, 0, 1, 1], [], []>} : vector<32x32xf32>, vector<32x128xf32>, vector<32x128xf32> -> vector<32x128xf32>
    %c2_18 = arith.constant 2 : index
    %c0_19 = arith.constant 0 : index
    %c0_20 = arith.constant 0 : index
    %22 = vector.load %arg4[%c2_18, %c0_19, %c0_20] : memref<6x32x1xf32, #tpu.memory_space<vmem>>, vector<1x32x1xf32>
    %23 = vector.shape_cast %22 : vector<1x32x1xf32> to vector<32x1xf32>
    %24 = vector.broadcast %23 : vector<32x1xf32> to vector<32x128xf32>
    %25 = arith.addf %21, %24 : vector<32x128xf32>
    %cst_21 = arith.constant 0.000000e+00 : f32
    %26 = vector.broadcast %cst_21 : f32 to vector<32x128xf32>
    %27 = arith.maximumf %25, %26 : vector<32x128xf32>
    %c3 = arith.constant 3 : index
    %c0_22 = arith.constant 0 : index
    %c0_23 = arith.constant 0 : index
    %28 = vector.load %arg3[%c3, %c0_22, %c0_23] : memref<9x32x32xf32, #tpu.memory_space<vmem>>, vector<1x32x32xf32>
    %29 = vector.shape_cast %28 : vector<1x32x32xf32> to vector<32x32xf32>
    %cst_24 = arith.constant dense<0.000000e+00> : vector<32x128xf32>
    %30 = tpu.matmul %29, %27, %cst_24 {dimension_numbers = #tpu.dot_dimension_numbers<[1], [0], [0], [1], [0, 0, 1, 1], [], []>} : vector<32x32xf32>, vector<32x128xf32>, vector<32x128xf32> -> vector<32x128xf32>
    %c4 = arith.constant 4 : index
    %c0_25 = arith.constant 0 : index
    %c0_26 = arith.constant 0 : index
    %31 = vector.load %arg3[%c4, %c0_25, %c0_26] : memref<9x32x32xf32, #tpu.memory_space<vmem>>, vector<1x32x24xf32>
    %32 = vector.shape_cast %31 : vector<1x32x24xf32> to vector<32x24xf32>
    %cst_27 = arith.constant dense<0.000000e+00> : vector<32x128xf32>
    %33 = tpu.matmul %32, %0, %cst_27 {dimension_numbers = #tpu.dot_dimension_numbers<[1], [0], [0], [1], [0, 0, 1, 1], [], []>} : vector<32x24xf32>, vector<24x128xf32>, vector<32x128xf32> -> vector<32x128xf32>
    %34 = arith.addf %30, %33 : vector<32x128xf32>
    %c3_28 = arith.constant 3 : index
    %c0_29 = arith.constant 0 : index
    %c0_30 = arith.constant 0 : index
    %35 = vector.load %arg4[%c3_28, %c0_29, %c0_30] : memref<6x32x1xf32, #tpu.memory_space<vmem>>, vector<1x32x1xf32>
    %36 = vector.shape_cast %35 : vector<1x32x1xf32> to vector<32x1xf32>
    %37 = vector.broadcast %36 : vector<32x1xf32> to vector<32x128xf32>
    %38 = arith.addf %34, %37 : vector<32x128xf32>
    %cst_31 = arith.constant 0.000000e+00 : f32
    %39 = vector.broadcast %cst_31 : f32 to vector<32x128xf32>
    %40 = arith.maximumf %38, %39 : vector<32x128xf32>
    %c5 = arith.constant 5 : index
    %c0_32 = arith.constant 0 : index
    %c0_33 = arith.constant 0 : index
    %41 = vector.load %arg3[%c5, %c0_32, %c0_33] : memref<9x32x32xf32, #tpu.memory_space<vmem>>, vector<1x32x32xf32>
    %42 = vector.shape_cast %41 : vector<1x32x32xf32> to vector<32x32xf32>
    %cst_34 = arith.constant dense<0.000000e+00> : vector<32x128xf32>
    %43 = tpu.matmul %42, %40, %cst_34 {dimension_numbers = #tpu.dot_dimension_numbers<[1], [0], [0], [1], [0, 0, 1, 1], [], []>} : vector<32x32xf32>, vector<32x128xf32>, vector<32x128xf32> -> vector<32x128xf32>
    %c4_35 = arith.constant 4 : index
    %c0_36 = arith.constant 0 : index
    %c0_37 = arith.constant 0 : index
    %44 = vector.load %arg4[%c4_35, %c0_36, %c0_37] : memref<6x32x1xf32, #tpu.memory_space<vmem>>, vector<1x32x1xf32>
    %45 = vector.shape_cast %44 : vector<1x32x1xf32> to vector<32x1xf32>
    %46 = vector.broadcast %45 : vector<32x1xf32> to vector<32x128xf32>
    %47 = arith.addf %43, %46 : vector<32x128xf32>
    %c0_38 = arith.constant 0 : index
    %c0_39 = arith.constant 0 : index
    %c0_40 = arith.constant 0 : index
    %48 = vector.load %arg2[%c0_38, %c0_39, %c0_40] : memref<1x32x1xf32, #tpu.memory_space<vmem>>, vector<1x32x1xf32>
    %49 = vector.shape_cast %48 : vector<1x32x1xf32> to vector<32x1xf32>
    %50 = vector.shape_cast %49 : vector<32x1xf32> to vector<32x1xf32>
    %51 = vector.broadcast %50 : vector<32x1xf32> to vector<32x128xf32>
    %c0_41 = arith.constant 0 : index
    %c0_42 = arith.constant 0 : index
    %52 = vector.load %arg6[%c0_41, %c0_42] : memref<32x128xf32, #tpu.memory_space<vmem>>, vector<32x128xf32>
    tpu.vector_store %arg6[%c0_41, %c0_42], %51 {strides = array<i32>} : memref<32x128xf32, #tpu.memory_space<vmem>>, vector<32x128xf32>,
    %c6 = arith.constant 6 : index
    %c0_43 = arith.constant 0 : index
    %c0_44 = arith.constant 0 : index
    %53 = vector.load %arg3[%c6, %c0_43, %c0_44] : memref<9x32x32xf32, #tpu.memory_space<vmem>>, vector<1x32x32xf32>
    %54 = vector.shape_cast %53 : vector<1x32x32xf32> to vector<32x32xf32>
    %cst_45 = arith.constant dense<0.000000e+00> : vector<32x128xf32>
    %55 = tpu.matmul %54, %47, %cst_45 {dimension_numbers = #tpu.dot_dimension_numbers<[1], [0], [0], [1], [0, 0, 1, 1], [], []>} : vector<32x32xf32>, vector<32x128xf32>, vector<32x128xf32> -> vector<32x128xf32>
    %c0_46 = arith.constant 0 : index
    %c0_47 = arith.constant 0 : index
    %56 = vector.load %arg6[%c0_46, %c0_47] : memref<32x128xf32, #tpu.memory_space<vmem>>, vector<32x128xf32>
    %57 = arith.addf %55, %56 : vector<32x128xf32>
    %cst_48 = arith.constant 0.000000e+00 : f32
    %58 = vector.broadcast %cst_48 : f32 to vector<32x128xf32>
    %59 = arith.maximumf %57, %58 : vector<32x128xf32>
    %c7 = arith.constant 7 : index
    %c0_49 = arith.constant 0 : index
    %c0_50 = arith.constant 0 : index
    %60 = vector.load %arg3[%c7, %c0_49, %c0_50] : memref<9x32x32xf32, #tpu.memory_space<vmem>>, vector<1x8x32xf32>
    %61 = vector.shape_cast %60 : vector<1x8x32xf32> to vector<8x32xf32>
    %cst_51 = arith.constant dense<0.000000e+00> : vector<8x128xf32>
    %62 = tpu.matmul %61, %59, %cst_51 {dimension_numbers = #tpu.dot_dimension_numbers<[1], [0], [0], [1], [0, 0, 1, 1], [], []>} : vector<8x32xf32>, vector<32x128xf32>, vector<8x128xf32> -> vector<8x128xf32>
    %c8 = arith.constant 8 : index
    %c0_52 = arith.constant 0 : index
    %c0_53 = arith.constant 0 : index
    %63 = vector.load %arg3[%c8, %c0_52, %c0_53] : memref<9x32x32xf32, #tpu.memory_space<vmem>>, vector<1x8x32xf32>
    %64 = vector.shape_cast %63 : vector<1x8x32xf32> to vector<8x32xf32>
    %cst_54 = arith.constant dense<0.000000e+00> : vector<8x128xf32>
    %65 = tpu.matmul %64, %40, %cst_54 {dimension_numbers = #tpu.dot_dimension_numbers<[1], [0], [0], [1], [0, 0, 1, 1], [], []>} : vector<8x32xf32>, vector<32x128xf32>, vector<8x128xf32> -> vector<8x128xf32>
    %66 = arith.addf %62, %65 : vector<8x128xf32>
    %c5_55 = arith.constant 5 : index
    %c0_56 = arith.constant 0 : index
    %c0_57 = arith.constant 0 : index
    %67 = vector.load %arg4[%c5_55, %c0_56, %c0_57] : memref<6x32x1xf32, #tpu.memory_space<vmem>>, vector<1x8x1xf32>
    %68 = vector.shape_cast %67 : vector<1x8x1xf32> to vector<8x1xf32>
    %69 = vector.broadcast %68 : vector<8x1xf32> to vector<8x128xf32>
    %70 = arith.addf %66, %69 : vector<8x128xf32>
    %c0_58 = arith.constant 0 : index
    %c0_59 = arith.constant 0 : index
    %71 = vector.load %arg5[%c0_58, %c0_59] : memref<8x128xf32, #tpu.memory_space<vmem>>, vector<8x128xf32>
    tpu.vector_store %arg5[%c0_58, %c0_59], %70 {strides = array<i32>} : memref<8x128xf32, #tpu.memory_space<vmem>>, vector<8x128xf32>,
    return
  }
  func.func @transform_0(%arg0: i32) -> (i32, i32) {
    %c0_i32 = arith.constant 0 : i32
    %c0_i32_0 = arith.constant 0 : i32
    return %c0_i32, %arg0 : i32, i32
  }
  func.func @transform_1(%arg0: i32) -> (i32, i32, i32) {
    %c0_i32 = arith.constant 0 : i32
    %c0_i32_0 = arith.constant 0 : i32
    %c0_i32_1 = arith.constant 0 : i32
    return %arg0, %c0_i32, %c0_i32_0 : i32, i32, i32
  }
  func.func @transform_2(%arg0: i32) -> (i32, i32, i32) {
    %c0_i32 = arith.constant 0 : i32
    %c0_i32_0 = arith.constant 0 : i32
    %c0_i32_1 = arith.constant 0 : i32
    %c0_i32_2 = arith.constant 0 : i32
    return %c0_i32, %c0_i32_0, %c0_i32_1 : i32, i32, i32
  }
  func.func @transform_3(%arg0: i32) -> (i32, i32, i32) {
    %c0_i32 = arith.constant 0 : i32
    %c0_i32_0 = arith.constant 0 : i32
    %c0_i32_1 = arith.constant 0 : i32
    %c0_i32_2 = arith.constant 0 : i32
    return %c0_i32, %c0_i32_0, %c0_i32_1 : i32, i32, i32
  }
  func.func @transform_4(%arg0: i32) -> (i32, i32) {
    %c0_i32 = arith.constant 0 : i32
    %c0_i32_0 = arith.constant 0 : i32
    return %c0_i32, %arg0 : i32, i32
  }
}

</mosaic_0001>

<bundles_post_ra>
// kernel: mlp_forward.1
= control target key start
LH: loop header
LB: loop body
LE: loop exit
PB: predicated region body
PF: predicated region fallthrough
CT: control target
= control target key end

     0   :  { %s1800_s15 = smov 0   ;;  %s1802_s16 = smov 0   ;;  %s2060_s0 = inlined_call_operand.vmem [shape: f32[24,256], index: 0, kind: input, shape index: {}]   ;;  %s2061_s1 = inlined_call_operand.vmem [shape: f32[2,32,1], index: 1, kind: input, shape index: {}]   ;;  %s2062_s2 = inlined_call_operand.vmem [shape: f32[9,32,32], index: 2, kind: input, shape index: {}]   ;;  %s2063_s3 = inlined_call_operand.vmem [shape: f32[6,32,1], index: 3, kind: input, shape index: {}]   ;;  %s2064_s4 = inlined_call_operand.vmem [shape: f32[8,256], index: 4, kind: output, shape index: {}]  }
   0x1   :  { %s1804_s17 = smov 0  }
   0x2 LB: > { %s1386_s18 = sadd.s32 4294967295, %s1769_s17   ;;  %s1817_s19 = sadd.s32 1, %s1769_s17   ;;  %s1769_s17 = sphi %s1804_s17, %s2067_s17   ;;  %s1765_s16 = sphi %s1802_s16, %s2066_s16   ;;  %s1761_s15 = sphi %s1800_s15, %s2065_s15  }
   0x3   : > { %s18_s20 = ssub.s32 %s1769_s17, %s1817_s19  ;;  %s21_s21 = sadd.s32 1, %s1765_s16 }
   0x4   : > { %p19_p0 = scmp.eq.s32.totalorder %s18_s20, 0  ;;  %p28_p1 = scmp.ne.s32.totalorder %s1765_s16, %s1761_s15 }
   0x5   : > { %p29_p2 = scmp.eq.s32.totalorder %s1769_s17, 0  ;;  %p1389_p4 = scmp.ge.s32.totalorder %s1769_s17, 2 }
   0x6   : > { %s1826_s22 = scalar_select %p19_p0, %s1765_s16, %s21_s21  }
   0x7   : > { %p30_p3 = por %p29_p2, %p28_p1  ;;  %154 = sbr.rel (%p1389_p4) target bundleno = 21 (0x15), region = 24 }
   0xe   : > { %157 = sbr.rel (!%p30_p3) target bundleno = 21 (0x15), region = 28  ;;  %s159_s23 = sand.u32 (%p30_p3), 1, %s1765_s16  }
   0xf   : > { %s1390_s24 = sshll.u32 (%p30_p3), %s1769_s17, 3  ;;  %s1715_s25 = smul.u32 (%p30_p3), 24, %s159_s23 }
  0x10   : > { %s163_s28 = scalar_lea.vmem (%p30_p3), %s2060_s0, %s1390_s24 }
  0x11   : > { %v195_v0 = vld [vmem:[%s163_s28] sm:$0xff] (%p30_p3)  ;;  %v197_v1 = vld [vmem:[%s163_s28 + $0x10] sm:$0xff] (%p30_p3)  ;;  %s161_s29 = scalar_lea.vmem (%p30_p3), [#allocation3], %s1715_s25 }
  0x12   : > { %v199_v2 = vld [vmem:[%s163_s28 + $0x20] sm:$0xff] (%p30_p3)  ;;  %196 = vst [vmem:[%s161_s29] sm:$0xff] (%p30_p3), %v195_v0  ;;  %198 = vst [vmem:[%s161_s29 + $0x8] sm:$0xff] (%p30_p3), %v197_v1 }
  0x13   : > { %200 = vst [vmem:[%s161_s29 + $0x10] sm:$0xff] (%p30_p3), %v199_v2 }
  0x15 PF: > { %p1391_p5 = scmp.ge.s32.totalorder %s1769_s17, 1  ;;  %p213_p6 = scmp.lt.s32.totalorder %s1769_s17, 3 }
  0x17   : > { %p214_p7 = pnand %p1391_p5, %p213_p6 }
  0x18   : > { %s220_s30 = sand.u32 (!%p214_p7), 1, %s1761_s15   ;;  %v261_v3 = vld [vmem:[%s2062_s2] sm:$0xff] (!%p214_p7)  ;;  %vm289_vm0 = vcmask (!%p214_p7), 195584   ;;  %v1771_v4 = vmov (!%p214_p7), 0   ;;  %v267_v6 = vld [vmem:[%s2063_s3 + $0x10] sm:$0xff] (!%p214_p7)  ;;  %v266_v7 = vld [vmem:[%s2063_s3 + $0x8] sm:$0xff] (!%p214_p7) }
  0x19   : > { %217 = sbr.rel (%p214_p7) target bundleno = 1614 (0x64e), region = 70  ;;  %1541 = vmatprep.mubr.msk.f32.mxu0 (!%p214_p7), %vm289_vm0, %v261_v3  ;;  %1745 = vset.pattern.permute.xlu0 (!%p214_p7), %v1771_v4  ;;  %v265_v5 = vld [vmem:[%s2063_s3] sm:$0xff] (!%p214_p7)  ;;  %v268_v10 = vld [vmem:[%s2063_s3 + $0x18] sm:$0xff] (!%p214_p7)  ;;  %v1404_v14 = vld [vmem:[%s2063_s3 + $0x28] sm:$0xff] (!%p214_p7)  ;;  %p249_p8 = scmp.lt.s32.totalorder (!%p214_p7), %s1386_s18, 1  ;;  %vm421_vm1 = vcmask (!%p214_p7), 261120  }
  0x1a   : > { %s1716_s7 = smul.u32 (!%p214_p7), 24, %s220_s30  ;;  %271 = vperm.xlu0 (!%p214_p7), %1745, %v265_v5   ;;  %1746 = vset.pattern.permute.xlu1 (!%p214_p7), %v1771_v4  ;;  %v1403_v13 = vld [vmem:[%s2063_s3 + $0x20] sm:$0xff] (!%p214_p7)  ;;  %v262_v15 = vld [vmem:[%s2062_s2 + $0x8] sm:$0xff] (!%p214_p7)  ;;  %v263_v16 = vld [vmem:[%s2062_s2 + $0x10] sm:$0xff] (!%p214_p7)  ;;  %vm1773_vm2 = vmmov (!%p214_p7), 0  }
  0x1b   : > { %281 = vperm.xlu1 (!%p214_p7), %1746, %v267_v6   ;;  %v1405_v17 = vld [vmem:[%s2063_s3 + $0x30] sm:$0xff] (!%p214_p7)  ;;  %v1406_v18 = vld [vmem:[%s2063_s3 + $0x38] sm:$0xff] (!%p214_p7)  ;;  %v1415_v20 = vld [vmem:[%s2063_s3 + $0x40] sm:$0xff] (!%p214_p7) }
  0x1c   : > { %s222_s14 = scalar_lea.vmem (!%p214_p7), [#allocation3], %s1716_s7  ;;  %v264_v19 = vld [vmem:[%s2062_s2 + $0x18] sm:$0xff] (!%p214_p7)  ;;  %v1416_v21 = vld [vmem:[%s2063_s3 + $0x48] sm:$0xff] (!%p214_p7)  ;;  %v1417_v22 = vld [vmem:[%s2063_s3 + $0x50] sm:$0xff] (!%p214_p7) }
  0x1d   : > { %v258_v8 = vld [vmem:[%s222_s14] sm:$0xff] (!%p214_p7)  ;;  %v259_v9 = vld [vmem:[%s222_s14 + $0x8] sm:$0xff] (!%p214_p7)  ;;  %v1855_v12 = vld [vmem:[%s222_s14 + $0x10] sm:$0xff] (!%p214_p7) }
  0x1e   : > { %v1853_v11 = vpack.c.bf16 (!%p214_p7), %v259_v9, %v258_v8  ;;  %276 = vperm.xlu0 (!%p214_p7), %1745, %v266_v7   ;;  %v1418_v23 = vld [vmem:[%s2063_s3 + $0x58] sm:$0xff] (!%p214_p7)  ;;  %v1439_v24 = vld [vmem:[%s2063_s3 + $0x60] sm:$0xff] (!%p214_p7)  ;;  %v1440_v25 = vld [vmem:[%s2063_s3 + $0x68] sm:$0xff] (!%p214_p7) }
  0x1f   : > { %286 = vperm.xlu1 (!%p214_p7), %1746, %v268_v10   ;;  %v1441_v26 = vld [vmem:[%s2063_s3 + $0x70] sm:$0xff] (!%p214_p7)  ;;  %v1442_v27 = vld [vmem:[%s2063_s3 + $0x78] sm:$0xff] (!%p214_p7)  ;;  %v1447_v28 = vld [vmem:[%s2063_s3 + $0x80] sm:$0xff] (!%p214_p7) }
  0x20   : > { %1652 = vmatprep.subr.bf16.mxu0 %v1853_v11  ;;  %s2069_s18 = smov (!%p249_p8, %s1386_s18), 1  ;;  %v1448_v29 = vld [vmem:[%s2063_s3 + $0x88] sm:$0xff]  ;;  %v1449_v30 = vld [vmem:[%s2063_s3 + $0x90] sm:$0xff]  ;;  %v1450_v31 = vld [vmem:[%s2063_s3 + $0x98] sm:$0xff] }
  0x21   : > { %1654 = vmatpush3.bf16.msra.mxu0 %v1853_v11  ;;  %s1470_s9 = sshll.u32 %s2069_s18, 5  ;;  %v1467_v36 = vld [vmem:[%s2063_s3 + $0xa0] sm:$0xff]  ;;  %v1400_v56 = vld [vmem:[%s2062_s2 + $0x28] sm:$0xff]  ;;  %v1401_v57 = vld [vmem:[%s2062_s2 + $0x30] sm:$0xff]  ;;  %s1394_s5 = sshll.u32 %s2069_s18, 3 }
  0x22   : > { %1539 = vmatprep.subr.mxu0 %v1855_v12  ;;  %403 = vperm.xlu0 %1745, %v1403_v13   ;;  %s253_s13 = scalar_lea.vmem %s2061_s1, %s1470_s9  ;;  %v1399_v37 = vld [vmem:[%s2062_s2 + $0x20] sm:$0xff]  ;;  %v1402_v58 = vld [vmem:[%s2062_s2 + $0x38] sm:$0xff]  ;;  %s257_s8 = scalar_lea.vmem %s2064_s4, %s1394_s5 }
  0x23   : > { %408 = vperm.xlu1 %1746, %v1404_v14   ;;  %v1018_v32 = vld [vmem:[%s253_s13] sm:$0xff]  ;;  %v1019_v33 = vld [vmem:[%s253_s13 + $0x8] sm:$0xff]  ;;  %v1020_v34 = vld [vmem:[%s253_s13 + $0x10] sm:$0xff]  ;;  %1555 = vmatprep.mubr.msk.f32.mxu1 %vm421_vm1, %v1399_v37 }
  0x24   : > { %v1021_v35 = vld [vmem:[%s253_s13 + $0x18] sm:$0xff]  ;;  %v1411_v59 = vld [vmem:[%s2062_s2 + $0x40] sm:$0xff]  ;;  %v1412_v14 = vld [vmem:[%s2062_s2 + $0x48] sm:$0xff] }
  0x25   : > { %1540 = vmatpush3.msra.mxu0 %v1855_v12 }
  0x26   : > { %1542 = vmatmul.mubr.msk.f32.vlgmr.msra.gmra.mrb[0].mxu0 %vm289_vm0, %v262_v15  ;;  %413 = vperm.xlu0 %1745, %v1405_v17   ;;  %v1413_v15 = vld [vmem:[%s2062_s2 + $0x50] sm:$0xff]  ;;  %v1427_v17 = vld [vmem:[%s2062_s2 + $0x80] sm:$0xff] }
  0x27   : > { %1544 = vmatprep.mubr.msk.f32.mxu0 %vm289_vm0, %v263_v16  ;;  %418 = vperm.xlu1 %1746, %v1406_v18   ;;  %v1414_v16 = vld [vmem:[%s2062_s2 + $0x58] sm:$0xff]  ;;  %v1428_v18 = vld [vmem:[%s2062_s2 + $0x88] sm:$0xff] }
  0x2a   : > { %1545 = vmatmul.mubr.msk.f32.gmra.mrb[2].mxu0 %vm289_vm0, %v264_v19  ;;  %535 = vperm.xlu0 %1745, %v1415_v20   ;;  %v1429_v19 = vld [vmem:[%s2062_s2 + $0x90] sm:$0xff]  ;;  %v1430_v20 = vld [vmem:[%s2062_s2 + $0x98] sm:$0xff] }
  0x2b   : > { %540 = vperm.xlu1 %1746, %v1416_v21   ;;  %1569 = vmatprep.mubr.msk.f32.mxu0 %vm421_vm1, %v1411_v59  ;;  %v1423_v21 = vld [vmem:[%s2062_s2 + $0x60] sm:$0xff] }
  0x2e   : > { %545 = vperm.xlu0 %1745, %v1417_v22  }
  0x2f   : > { %550 = vperm.xlu1 %1746, %v1418_v23  }
  0x32   : > { %865 = vperm.xlu0 %1745, %v1439_v24  }
  0x33   : > { %870 = vperm.xlu1 %1746, %v1440_v25  }
  0x36   : > { %875 = vperm.xlu0 %1745, %v1441_v26  }
  0x37   : > { %880 = vperm.xlu1 %1746, %v1442_v27  }
  0x3a   : > { %903 = vperm.xlu0 %1745, %v1447_v28  }
  0x3b   : > { %908 = vperm.xlu1 %1746, %v1448_v29  }
  0x3e   : > { %913 = vperm.xlu0 %1745, %v1449_v30  }
  0x3f   : > { %918 = vperm.xlu1 %1746, %v1450_v31  }
  0x42   : > { %1024 = vperm.xlu0 %1745, %v1018_v32  }
  0x43   : > { %1029 = vperm.xlu1 %1746, %v1019_v33  }
  0x46   : > { %1034 = vperm.xlu0 %1745, %v1020_v34  }
  0x47   : > { %1039 = vperm.xlu1 %1746, %v1021_v35  }
  0x4a   : > { %1310 = vperm.xlu0 %1745, %v1467_v36  }
  0x99   : > { %v272_v38 = vpop.permute.xlu0 %271 }
  0x9a   : > { %v282_v39 = vpop.permute.xlu1 %281 }
  0x9d   : > { %v277_v40 = vpop.permute.xlu0 %276 }
  0x9e   : > { %v287_v46 = vpop.permute.xlu1 %286 }
  0xa1   : > { %v404_v61 = vpop.permute.xlu0 %403 }
  0xa2   : > { %v409_v60 = vpop.permute.xlu1 %408 }
  0xa5   : > { %v414_v6 = vpop.permute.xlu0 %413 }
  0xa6   : > { %v419_v3 = vpop.permute.xlu1 %418 }
  0xa9   : > { %v536_v23 = vpop.permute.xlu0 %535 }
  0xaa   : > { %v541_v22 = vpop.permute.xlu1 %540 }
  0xad   : > { %v546_v32 = vpop.permute.xlu0 %545 }
  0xae   : > { %v551_v29 = vpop.permute.xlu1 %550 }
  0xf9   : > { %v1543_v41 = vpop.f32.mrb[0].mxu0 }
  0xfa   : > { %v374_v42 = vadd.f32 %v1543_v41, %v277_v40  ;;  %v368_v43 = vpop.f32.mrb[1].mxu0  ;;  %v1424_v40 = vld [vmem:[%s2062_s2 + $0x68] sm:$0xff]  ;;  %v1425_v41 = vld [vmem:[%s2062_s2 + $0x70] sm:$0xff] }
  0xfb   : > { %v369_v44 = vadd.f32 %v368_v43, %v272_v38  ;;  %v1772_v43 = vmov 0.0|0.0  }
  0xfc   : > { %v388_v45 = vmax.f32 %v374_v42, 0.0  ;;  %v1426_v42 = vld [vmem:[%s2062_s2 + $0x78] sm:$0xff] }
  0xfd   : > { %v387_v47 = vmax.f32 %v369_v44, 0.0  ;;  %v1546_v48 = vpop.f32.mrb[2].mxu0  ;;  %v1443_v44 = vld [vmem:[%s2062_s2 + $0xa0] sm:$0xff] }
  0xfe   : > { %v384_v49 = vadd.f32 %v1546_v48, %v287_v46  ;;  %v378_v50 = vpop.f32.mrb[3].mxu0  ;;  %v866_v46 = vpop.permute.xlu0 %865 }
  0xff   : > { %v379_v51 = vadd.f32 %v378_v50, %v282_v39  ;;  %v1655_v52 = vpack.c.bf16 %v388_v45, %v387_v47  ;;  %v871_v45 = vpop.permute.xlu1 %870 }
 0x100   : > { %v390_v53 = vmax.f32 %v384_v49, 0.0 }
 0x101   : > { %v389_v54 = vmax.f32 %v379_v51, 0.0  ;;  %1656 = vmatprep.subr.bf16.mxu1 %v1655_v52 }
 0x102   : > { %1658 = vmatpush3.bf16.msra.mxu1 %v1655_v52 }
 0x103   : > { %v1659_v55 = vpack.c.bf16 %v390_v53, %v389_v54  ;;  %v881_v52 = vpop.permute.xlu1 %880 }
 0x105   : > { %1660 = vmatprep.subr.bf16.mxu1 %v1659_v55 }
 0x106   : > { %1662 = vmatpush3.bf16.msra.mxu1 %v1659_v55  ;;  %v876_v55 = vpop.permute.xlu0 %875 }
 0x107   : > { %1672 = vmatprep.subr.bf16.mxu1 %v1853_v11 }
 0x109   : > { %1556 = vmatmul.mubr.msk.f32.vlgmr.msra.gmra.mrb[0].mxu1 %vm421_vm1, %v1400_v56 }
 0x10a   : > { %1558 = vmatprep.mubr.msk.f32.mxu1 %vm421_vm1, %v1401_v57  ;;  %1674 = vmatpush3.bf16.msra.mxu1 %v1853_v11 }
 0x10b   : > { %1579 = vmatprep.subr.mxu1 %v1855_v12 }
 0x10d   : > { %1559 = vmatmul.mubr.msk.f32.gmra.mrb[2].mxu1 %vm421_vm1, %v1402_v58 }
 0x10e   : > { %1580 = vmatpush3.msra.mxu1 %v1855_v12  ;;  %1581 = vmatprep.mubr.msk.f32.mxu1 %vm289_vm0, %v1427_v17  ;;  %v1456_v17 = vld [vmem:[%s2062_s2 + $0xc8] sm:$0xff] }
 0x111   : > { %1582 = vmatmul.mubr.msk.f32.vlgmr.msra.gmra.mrb[4].mxu1 %vm289_vm0, %v1428_v18  ;;  %v1457_v18 = vld [vmem:[%s2062_s2 + $0xd0] sm:$0xff] }
 0x112   : > { %1584 = vmatprep.mubr.msk.f32.mxu1 %vm289_vm0, %v1429_v19  ;;  %v1458_v19 = vld [vmem:[%s2062_s2 + $0xd8] sm:$0xff] }
 0x115   : > { %1585 = vmatmul.mubr.msk.f32.gmra.mrb[6].mxu1 %vm289_vm0, %v1430_v20  ;;  %v1464_v20 = vld [vmem:[%s2062_s2 + $0x100] sm:$0xff] }
 0x116   : > { %1595 = vmatprep.mubr.msk.f32.mxu1 %vm421_vm1, %v1423_v21  ;;  %v1774_v21 = vmov 0.0  }
 0x1dc   : > { %v1557_v62 = vpop.f32.mrb[0].mxu1 }
 0x1dd   : > { %v506_v63 = vadd.f32 %v1557_v62, %v409_v60  ;;  %v500_v0 = vpop.f32.mrb[1].mxu1 }
 0x1de   : > { %v501_v1 = vadd.f32 %v500_v0, %v404_v61  ;;  %v1445_v0 = vld [vmem:[%s2062_s2 + $0xb0] sm:$0xff] }
 0x1df   : > { %v520_v2 = vmax.f32 %v506_v63, 0.0  ;;  %v1444_v63 = vld [vmem:[%s2062_s2 + $0xa8] sm:$0xff] }
 0x1e0   : > { %v519_v4 = vmax.f32 %v501_v1, 0.0  ;;  %v1560_v5 = vpop.f32.mrb[2].mxu1  ;;  %v1446_v1 = vld [vmem:[%s2062_s2 + $0xb8] sm:$0xff] }
 0x1e1   : > { %v516_v7 = vadd.f32 %v1560_v5, %v419_v3  ;;  %v510_v8 = vpop.f32.mrb[3].mxu1  ;;  %v909_v3 = vpop.permute.xlu1 %908 }
 0x1e2   : > { %v1663_v9 = vpack.c.bf16 %v520_v2, %v519_v4  ;;  %v511_v10 = vadd.f32 %v510_v8, %v414_v6  ;;  %v1455_v2 = vld [vmem:[%s2062_s2 + $0xc0] sm:$0xff]  ;;  %v904_v4 = vpop.permute.xlu0 %903 }
 0x1e3   : > { %v522_v11 = vmax.f32 %v516_v7, 0.0 }
 0x1e4   : > { %v521_v12 = vmax.f32 %v511_v10, 0.0  ;;  %1664 = vmatprep.subr.bf16.mxu0 %v1663_v9 }
 0x1e5   : > { %1666 = vmatpush3.bf16.msra.mxu0 %v1663_v9  ;;  %v919_v9 = vpop.permute.xlu1 %918 }
 0x1e6   : > { %v1667_v13 = vpack.c.bf16 %v522_v11, %v521_v12  ;;  %v914_v12 = vpop.permute.xlu0 %913 }
 0x1e8   : > { %1668 = vmatprep.subr.bf16.mxu0 %v1667_v13 }
 0x1e9   : > { %1670 = vmatpush3.bf16.msra.mxu0 %v1667_v13 }
 0x1ec   : > { %1570 = vmatmul.mubr.msk.f32.vlgmr.msra.gmra.mrb[4].mxu0 %vm421_vm1, %v1412_v14 }
 0x1ed   : > { %1572 = vmatprep.mubr.msk.f32.mxu0 %vm421_vm1, %v1413_v15 }
 0x1f0   : > { %1573 = vmatmul.mubr.msk.f32.gmra.mrb[6].mxu0 %vm421_vm1, %v1414_v16 }
 0x1f1   : > { %1609 = vmatprep.mubr.msk.f32.mxu0 %vm421_vm1, %v1443_v44 }
 0x2bf   : > { %v1571_v24 = vpop.f32.mrb[4].mxu0 }
 0x2c0   : > { %v637_v25 = vadd.f32 %v1571_v24, %v541_v22  ;;  %v631_v26 = vpop.f32.mrb[5].mxu0  ;;  %v1030_v22 = vpop.permute.xlu1 %1029 }
 0x2c1   : > { %v632_v27 = vadd.f32 %v631_v26, %v536_v23  ;;  %v1025_v23 = vpop.permute.xlu0 %1024 }
 0x2c2   : > { %v651_v28 = vmax.f32 %v637_v25, 0.0 }
 0x2c3   : > { %v650_v30 = vmax.f32 %v632_v27, 0.0  ;;  %v1574_v31 = vpop.f32.mrb[6].mxu0 }
 0x2c4   : > { %v647_v33 = vadd.f32 %v1574_v31, %v551_v29  ;;  %v641_v34 = vpop.f32.mrb[7].mxu0  ;;  %v1040_v29 = vpop.permute.xlu1 %1039 }
 0x2c5   : > { %v1675_v35 = vpack.c.bf16 %v651_v28, %v650_v30  ;;  %v642_v36 = vadd.f32 %v641_v34, %v546_v32  ;;  %v1035_v32 = vpop.permute.xlu0 %1034 }
 0x2c6   : > { %v653_v37 = vmax.f32 %v647_v33, 0.0 }
 0x2c7   : > { %v652_v38 = vmax.f32 %v642_v36, 0.0  ;;  %1676 = vmatprep.subr.bf16.mxu1 %v1675_v35 }
 0x2c8   : > { %1678 = vmatpush3.bf16.msra.mxu1 %v1675_v35 }
 0x2c9   : > { %v1679_v39 = vpack.c.bf16 %v653_v37, %v652_v38 }
 0x2cb   : > { %1680 = vmatprep.subr.bf16.mxu1 %v1679_v39 }
 0x2cc   : > { %1682 = vmatpush3.bf16.msra.mxu1 %v1679_v39 }
 0x2cd   : > { %1699 = vmatprep.subr.bf16.mxu1 %v1772_v43 }
 0x2cf   : > { %1596 = vmatmul.mubr.msk.f32.vlgmr.msra.gmra.mrb[4].mxu1 %vm421_vm1, %v1424_v40  ;;  %v1463_v40 = vld [vmem:[%s2062_s2 + $0xe0] sm:$0xff] }
 0x2d0   : > { %1598 = vmatprep.mubr.msk.f32.mxu1 %vm421_vm1, %v1425_v41 }
 0x2d3   : > { %1599 = vmatmul.mubr.msk.f32.gmra.mrb[6].mxu1 %vm421_vm1, %v1426_v42 }
 0x2d4   : > { %1637 = vmatprep.mubr.msk.f32.mxu1 %vm1773_vm2, %v1774_v21 }
 0x3a2   : > { %v1597_v47 = vpop.f32.mrb[4].mxu1 }
 0x3a3   : > { %v884_v48 = vadd.f32 %v1597_v47, %v871_v45  ;;  %v839_v49 = vpop.f32.mrb[5].mxu1  ;;  %v1311_v47 = vpop.permute.xlu0 %1310 }
 0x3a4   : > { %v883_v50 = vadd.f32 %v866_v46, %v839_v49 }
 0x3a5   : > { %v888_v51 = vmax.f32 %v884_v48, 0.0 }
 0x3a6   : > { %v887_v53 = vmax.f32 %v883_v50, 0.0  ;;  %v1600_v54 = vpop.f32.mrb[6].mxu1 }
 0x3a7   : > { %v886_v56 = vadd.f32 %v1600_v54, %v881_v52  ;;  %v849_v57 = vpop.f32.mrb[7].mxu1 }
 0x3a8   : > { %v1683_v58 = vpack.c.bf16 %v888_v51, %v887_v53  ;;  %v885_v59 = vadd.f32 %v876_v55, %v849_v57 }
 0x3a9   : > { %v890_v60 = vmax.f32 %v886_v56, 0.0 }
 0x3aa   : > { %v889_v61 = vmax.f32 %v885_v59, 0.0  ;;  %1684 = vmatprep.subr.bf16.mxu0 %v1683_v58  ;;  %1701 = vmatpush3.bf16.msra.mxu1 %v1683_v58 }
 0x3ab   : > { %1686 = vmatpush3.bf16.msra.mxu0 %v1683_v58  ;;  %1702 = vmatprep.subr.bf16.mxu1 %v1772_v43 }
 0x3ac   : > { %v1687_v62 = vpack.c.bf16 %v890_v60, %v889_v61 }
 0x3ae   : > { %1688 = vmatprep.subr.bf16.mxu0 %v1687_v62  ;;  %1704 = vmatpush3.bf16.msra.mxu1 %v1687_v62 }
 0x3af   : > { %1690 = vmatpush3.bf16.msra.mxu0 %v1687_v62 }
 0x3b1   : > { %1638 = vmatmul.mubr.msk.f32.vlgmr.msra.gmra.mrb[8].mxu1 %vm421_vm1, %v1464_v20 }
 0x3b2   : > { %1610 = vmatmul.mubr.msk.f32.vlgmr.msra.gmra.mrb[8].mxu0 %vm421_vm1, %v1444_v63 }
 0x3b3   : > { %1612 = vmatprep.mubr.msk.f32.mxu0 %vm421_vm1, %v1445_v0 }
 0x3b6   : > { %1613 = vmatmul.mubr.msk.f32.gmra.mrb[10].mxu0 %vm421_vm1, %v1446_v1 }
 0x3b7   : > { %1623 = vmatprep.mubr.msk.f32.mxu0 %vm421_vm1, %v1455_v2 }
 0x484   : > { %v1229_v41 = vpop.f32.mrb[8].mxu1 }
 0x485   : > { %v1611_v5 = vpop.f32.mrb[8].mxu0  ;;  %v1639_v42 = vpop.f32.mrb[9].mxu1 }
 0x486   : > { %v1005_v6 = vadd.f32 %v1611_v5, %v909_v3  ;;  %v999_v7 = vpop.f32.mrb[9].mxu0 }
 0x487   : > { %v1000_v8 = vadd.f32 %v999_v7, %v904_v4 }
 0x489   : > { %v1691_v10 = vpack.c.bf16 %v1005_v6, %v1000_v8  ;;  %v1614_v11 = vpop.f32.mrb[10].mxu0 }
 0x48a   : > { %v1015_v13 = vadd.f32 %v1614_v11, %v919_v9  ;;  %v1009_v14 = vpop.f32.mrb[11].mxu0 }
 0x48b   : > { %v1010_v15 = vadd.f32 %v1009_v14, %v914_v12  ;;  %1692 = vmatprep.subr.bf16.mxu0 %v1691_v10 }
 0x48c   : > { %1694 = vmatpush3.bf16.msra.mxu0 %v1691_v10 }
 0x48d   : > { %v1695_v16 = vpack.c.bf16 %v1015_v13, %v1010_v15 }
 0x48f   : > { %1696 = vmatprep.subr.bf16.mxu0 %v1695_v16 }
 0x490   : > { %1698 = vmatpush3.bf16.msra.mxu0 %v1695_v16 }
 0x491   : > { %1705 = vmatprep.subr.bf16.mxu0 %v1772_v43 }
 0x493   : > { %1624 = vmatmul.mubr.msk.f32.vlgmr.msra.gmra.mrb[12].mxu0 %vm421_vm1, %v1456_v17 }
 0x494   : > { %1626 = vmatprep.mubr.msk.f32.mxu0 %vm421_vm1, %v1457_v18 }
 0x497   : > { %1627 = vmatmul.mubr.msk.f32.gmra.mrb[14].mxu0 %vm421_vm1, %v1458_v19 }
 0x498   : > { %1648 = vmatprep.mubr.msk.f32.mxu0 %vm1773_vm2, %v1774_v21 }
 0x566   : > { %v1625_v24 = vpop.f32.mrb[12].mxu0 }
 0x567   : > { %v1139_v25 = vadd.f32 %v1625_v24, %v1030_v22  ;;  %v1133_v26 = vpop.f32.mrb[13].mxu0 }
 0x568   : > { %v1134_v27 = vadd.f32 %v1133_v26, %v1025_v23 }
 0x569   : > { %v1153_v28 = vmax.f32 %v1139_v25, 0.0 }
 0x56a   : > { %v1152_v30 = vmax.f32 %v1134_v27, 0.0  ;;  %v1628_v31 = vpop.f32.mrb[14].mxu0 }
 0x56b   : > { %v1149_v33 = vadd.f32 %v1628_v31, %v1040_v29  ;;  %v1143_v34 = vpop.f32.mrb[15].mxu0 }
 0x56c   : > { %v1706_v35 = vpack.c.bf16 %v1153_v28, %v1152_v30  ;;  %v1144_v36 = vadd.f32 %v1143_v34, %v1035_v32 }
 0x56d   : > { %v1155_v37 = vmax.f32 %v1149_v33, 0.0 }
 0x56e   : > { %v1154_v38 = vmax.f32 %v1144_v36, 0.0  ;;  %1707 = vmatpush3.bf16.msra.mxu0 %v1706_v35 }
 0x56f   : > { %1708 = vmatprep.subr.bf16.mxu0 %v1772_v43 }
 0x570   : > { %v1709_v39 = vpack.c.bf16 %v1155_v37, %v1154_v38 }
 0x572   : > { %1710 = vmatpush3.bf16.msra.mxu0 %v1709_v39 }
 0x575   : > { %1649 = vmatmul.mubr.msk.f32.vlgmr.msra.gmra.mrb[16].mxu0 %vm421_vm1, %v1463_v40 }
 0x648   : > { %v1302_v44 = vpop.f32.mrb[16].mxu0 }
 0x649   : > { %v1303_v45 = vadd.f32 %v1302_v44, %v1229_v41  ;;  %v1650_v46 = vpop.f32.mrb[17].mxu0 }
 0x64b   : > { %v1313_v43 = vadd.f32 %v1311_v47, %v1303_v45 }
 0x64d   : > { %1314 = vst [vmem:[%s257_s8] sm:$0xff] %v1313_v43 }
 0x64e PF: > { %p11_p9 = scmp.ge.s32.totalorder %s1817_s19, 4   ;;  %s2065_s15 = smov %s1765_s16 }
 0x64f   : > { %s2066_s16 = smov %s1826_s22  ;;  %s2067_s17 = smov %s1817_s19 }
 0x650   :  { %13 = sbr.rel (!%p11_p9) target bundleno = 2 (0x2), region = 125 }

</bundles_post_ra>
